<compile_context>
chip_gen: v7x
topology: tpu7x:2x2x1
jax: 0.10.0
libtpu: 0.0.40
codegen_flags: <defaults>
</compile_context>

<pallas_src>
import functools

import jax
import jax.numpy as jnp
from jax.experimental import pallas as pl
from jax.experimental.pallas import tpu as pltpu


def _patch_embed_kernel(p_ref, w_ref, b_ref, o_ref):
    # p_ref: (1, K, tl)  bf16  -- K = C*pd*ph*pw patch pixels for tl patches
    # w_ref: (E, K)      bf16  -- flattened Conv3d weight
    # b_ref: (E, 1)      f32
    # o_ref: (1, E, tl)  f32   -- transposed so the L-tile is the lane dim
    acc = jnp.dot(w_ref[...], p_ref[0], preferred_element_type=jnp.float32)
    o_ref[0] = (acc + b_ref[...]).astype(o_ref.dtype)


def _round_up(a, b):
    return (a + b - 1) // b * b


def _pick_l_tile(L, B, K, E, tl_req):
    """L (patch-count) tile: multiple of 128, VMEM-bounded, >=2 grid steps."""
    tl = max(128, min(int(tl_req), 4096))
    tl = (tl // 128) * 128

    # Stay well under the default scoped-VMEM limit (32 MiB; v7x has only
    # 64 MiB physical VMEM): double-buffered bf16 patches + f32 output blocks,
    # plus the f32 accumulator and the (resident) weight/bias.
    def vmem_bytes(t):
        return (2 * (K * t * 2)              # patches blocks, bf16, 2 buffers
                + 2 * (E * t * 4)            # output blocks, f32, 2 buffers
                + E * t * 4                  # f32 accumulator value
                + 2 * (E * K * 2 + E * 4))   # weight + bias

    while tl > 128 and vmem_bytes(tl) > 24 * 1024 * 1024:
        tl -= 128

    if L <= tl:
        return L          # one (possibly lane-masked) block per batch entry
    if B == 1 and L < 2 * tl:
        # Split L so the 'parallel' axis has >= 2 steps (v7x has 2 TensorCores).
        tl = min(_round_up(max(L // 2, 1), 128), tl)
    return tl


def patch_embed_3d(x, weight, bias, patch_size=(4, 4, 4), *, tl=1024):
    """Pallas implementation of PatchEmbed3D.forward.

    x:      (B, C, D, H, W)      float32  (NCDHW, same as PyTorch)
    weight: (E, C, pd, ph, pw)   float32  (nn.Conv3d.weight layout)
    bias:   (E,)                 float32
    returns (B, E, D', H', W')   float32
    """
    B, C, D, H, W = x.shape
    pd, ph, pw = patch_size
    E = weight.shape[0]

    # Zero-pad so each spatial dim is divisible by the patch size (as PyTorch).
    pad_d = (pd - D % pd) % pd
    pad_h = (ph - H % ph) % ph
    pad_w = (pw - W % pw) % pw
    if pad_d or pad_h or pad_w:
        x = jnp.pad(x, ((0, 0), (0, 0), (0, pad_d), (0, pad_h), (0, pad_w)))
    Dp, Hp, Wp = (D + pad_d) // pd, (H + pad_h) // ph, (W + pad_w) // pw
    K = C * pd * ph * pw
    L = Dp * Hp * Wp

    # --- patchify (layout-only, done by XLA; the bf16 cast fuses into it) ---
    # (B,C,Dp,pd,Hp,ph,Wp,pw) -> (B, C,pd,ph,pw, Dp,Hp,Wp) -> (B, K, L)
    # The K ordering (C,pd,ph,pw) matches Conv3d weight row-major layout and the
    # L ordering (Dp,Hp,Wp) matches the NCDHW output, so neither the weight nor
    # the kernel output needs any further transpose.
    # TODO(synk): fuse this space-to-depth relayout into the kernel itself (an
    # in-kernel 6-D transpose of 4-wide sub-dims is not reliably lowerable by
    # Mosaic today); it is the one remaining extra HBM pass.
    xp = x.reshape(B, C, Dp, pd, Hp, ph, Wp, pw)
    xp = xp.transpose(0, 1, 3, 5, 7, 2, 4, 6)
    patches_t = xp.reshape(B, K, L).astype(jnp.bfloat16)

    w2d = weight.reshape(E, K).astype(jnp.bfloat16)   # (E, K)
    b2d = bias.astype(jnp.float32).reshape(E, 1)      # (E, 1)

    tl = _pick_l_tile(L, B, K, E, tl)
    grid = (B, pl.cdiv(L, tl))                        # masked partial last tile

    out = pl.pallas_call(
        _patch_embed_kernel,
        out_shape=jax.ShapeDtypeStruct((B, E, L), x.dtype),
        grid_spec=pltpu.PrefetchScalarGridSpec(
            num_scalar_prefetch=0,
            grid=grid,
            in_specs=[
                pl.BlockSpec((1, K, tl), lambda b, l: (b, 0, l)),
                pl.BlockSpec((E, K), lambda b, l: (0, 0)),
                pl.BlockSpec((E, 1), lambda b, l: (0, 0)),
            ],
            out_specs=pl.BlockSpec((1, E, tl), lambda b, l: (b, 0, l)),
        ),
        compiler_params=pltpu.CompilerParams(
            dimension_semantics=("parallel", "parallel"),
        ),
    )(patches_t, w2d, b2d)

    # (B, E, L) -> (B, E, D', H', W') is a free reshape (no transpose needed).
    return out.reshape(B, E, Dp, Hp, Wp)


def _reference(x, weight, bias, patch_size):
    """Plain-JAX f32 reference (strided Conv3d == patchify + matmul)."""
    B, C, D, H, W = x.shape
    pd, ph, pw = patch_size
    E = weight.shape[0]
    pad_d = (pd - D % pd) % pd
    pad_h = (ph - H % ph) % ph
    pad_w = (pw - W % pw) % pw
    x = jnp.pad(x, ((0, 0), (0, 0), (0, pad_d), (0, pad_h), (0, pad_w)))
    Dp, Hp, Wp = (D + pad_d) // pd, (H + pad_h) // ph, (W + pad_w) // pw
    xp = x.reshape(B, C, Dp, pd, Hp, ph, Wp, pw).transpose(0, 2, 4, 6, 1, 3, 5, 7)
    patches = xp.reshape(B * Dp * Hp * Wp, C * pd * ph * pw)
    out = patches @ weight.reshape(E, -1).T + bias[None, :]
    return out.reshape(B, Dp, Hp, Wp, E).transpose(0, 4, 1, 2, 3)


if __name__ == "__main__":
    patch_size = (4, 4, 4)
    in_channels = 3
    embed_dim = 96

    key = jax.random.PRNGKey(0)
    kx, kw, kb, kx2 = jax.random.split(key, 4)
    weight = (
        jax.random.normal(kw, (embed_dim, in_channels, *patch_size), dtype=jnp.float32)
        * 0.02
    )
    bias = jax.random.normal(kb, (embed_dim,), dtype=jnp.float32) * 0.02

    # Case 1: module defaults, spatial dims divisible by the patch size.
    B, D, H, W = 2, 16, 16, 16
    x = jax.random.normal(kx, (B, in_channels, D, H, W), dtype=jnp.float32)
    fn = jax.jit(functools.partial(patch_embed_3d, patch_size=patch_size))
    out = fn(x, weight, bias)
    jax.block_until_ready(out)
    ref = _reference(x, weight, bias, patch_size)
    assert out.shape == (B, embed_dim, D // 4, H // 4, W // 4), out.shape
    # bf16 input/weight stream (f32 accumulation) -> relaxed tolerance vs f32 ref.
    assert jnp.allclose(out, ref, atol=2e-2, rtol=2e-2), "case 1 mismatch vs reference"

    # Case 2: exercises the spatial-pad branch (D=7 -> 8) and the masked partial
    # last L-tile: L = 2*9*10 = 180 with tl=128 -> grid (1, 2).
    x2 = jax.random.normal(kx2, (1, in_channels, 7, 36, 40), dtype=jnp.float32)
    fn2 = jax.jit(functools.partial(patch_embed_3d, patch_size=patch_size, tl=128))
    out2 = fn2(x2, weight, bias)
    jax.block_until_ready(out2)
    ref2 = _reference(x2, weight, bias, patch_size)
    assert out2.shape == (1, embed_dim, 2, 9, 10), out2.shape
    assert jnp.allclose(out2, ref2, atol=2e-2, rtol=2e-2), "case 2 mismatch vs reference"

    print("KERNEL_OK")
</pallas_src>

<mosaic_0001>
module attributes {stable_mosaic.version = 11 : i64} {
  func.func @_patch_embed_kernel(%arg0: i32, %arg1: i32, %arg2: memref<1x192x64xbf16, #tpu.memory_space<vmem>>, %arg3: memref<96x192xbf16, #tpu.memory_space<vmem>>, %arg4: memref<96x1xf32, #tpu.memory_space<vmem>>, %arg5: memref<1x96x64xf32, #tpu.memory_space<vmem>>) attributes {dimension_semantics = [#tpu.dimension_semantics<parallel>, #tpu.dimension_semantics<parallel>], iteration_bounds = array<i64: 2, 1>, scalar_prefetch = 0 : i64, scratch_operands = 0 : i64, tpu.core_type = #tpu.core_type<tc>, window_params = [{transform_indices = @transform_0, window_bounds = array<i64: 1, 192, 64>}, {pipeline_mode = #tpu.pipeline_mode<synchronous>, transform_indices = @transform_1, window_bounds = array<i64: 96, 192>}, {pipeline_mode = #tpu.pipeline_mode<synchronous>, transform_indices = @transform_2, window_bounds = array<i64: 96, 1>}, {transform_indices = @transform_3, window_bounds = array<i64: 1, 96, 64>}]} {
    %c0 = arith.constant 0 : index
    %c0_0 = arith.constant 0 : index
    %0 = vector.load %arg3[%c0, %c0_0] : memref<96x192xbf16, #tpu.memory_space<vmem>>, vector<96x192xbf16>
    %c0_1 = arith.constant 0 : index
    %c0_2 = arith.constant 0 : index
    %c0_3 = arith.constant 0 : index
    %1 = vector.load %arg2[%c0_1, %c0_2, %c0_3] : memref<1x192x64xbf16, #tpu.memory_space<vmem>>, vector<1x192x64xbf16>
    %2 = vector.shape_cast %1 : vector<1x192x64xbf16> to vector<192x64xbf16>
    %cst = arith.constant dense<0.000000e+00> : vector<96x64xf32>
    %3 = tpu.matmul %0, %2, %cst {dimension_numbers = #tpu.dot_dimension_numbers<[1], [0], [0], [1], [0, 0, 1, 1], [], []>} : vector<96x192xbf16>, vector<192x64xbf16>, vector<96x64xf32> -> vector<96x64xf32>
    %c0_4 = arith.constant 0 : index
    %c0_5 = arith.constant 0 : index
    %4 = vector.load %arg4[%c0_4, %c0_5] : memref<96x1xf32, #tpu.memory_space<vmem>>, vector<96x1xf32>
    %5 = vector.broadcast %4 : vector<96x1xf32> to vector<96x64xf32>
    %6 = arith.addf %3, %5 : vector<96x64xf32>
    %c0_6 = arith.constant 0 : index
    %c0_7 = arith.constant 0 : index
    %c0_8 = arith.constant 0 : index
    %7 = vector.load %arg5[%c0_6, %c0_7, %c0_8] : memref<1x96x64xf32, #tpu.memory_space<vmem>>, vector<1x96x64xf32>
    %8 = vector.shape_cast %7 : vector<1x96x64xf32> to vector<96x64xf32>
    %9 = vector.shape_cast %6 : vector<96x64xf32> to vector<1x96x64xf32>
    tpu.vector_store %arg5[%c0_6, %c0_7, %c0_8], %9 {strides = array<i32>} : memref<1x96x64xf32, #tpu.memory_space<vmem>>, vector<1x96x64xf32>,
    return
  }
  func.func @transform_0(%arg0: i32, %arg1: i32) -> (i32, i32, i32) {
    %c0_i32 = arith.constant 0 : i32
    %c0_i32_0 = arith.constant 0 : i32
    return %arg0, %c0_i32, %arg1 : i32, i32, i32
  }
  func.func @transform_1(%arg0: i32, %arg1: i32) -> (i32, i32) {
    %c0_i32 = arith.constant 0 : i32
    %c0_i32_0 = arith.constant 0 : i32
    %c0_i32_1 = arith.constant 0 : i32
    return %c0_i32, %c0_i32_0 : i32, i32
  }
  func.func @transform_2(%arg0: i32, %arg1: i32) -> (i32, i32) {
    %c0_i32 = arith.constant 0 : i32
    %c0_i32_0 = arith.constant 0 : i32
    %c0_i32_1 = arith.constant 0 : i32
    return %c0_i32, %c0_i32_0 : i32, i32
  }
  func.func @transform_3(%arg0: i32, %arg1: i32) -> (i32, i32, i32) {
    %c0_i32 = arith.constant 0 : i32
    %c0_i32_0 = arith.constant 0 : i32
    return %arg0, %c0_i32, %arg1 : i32, i32, i32
  }
}

</mosaic_0001>

<bundles_post_ra>
// kernel: patch_embed_3d.1
= control target key start
LH: loop header
LB: loop body
LE: loop exit
PB: predicated region body
PF: predicated region fallthrough
CT: control target
= control target key end

     0   :  { %s798_s12 = smov 0   ;;  %s800_s13 = smov 0   ;;  %s982_s0 = inlined_call_operand.vmem [shape: bf16[2,192,64], index: 0, kind: input, shape index: {}]   ;;  %s983_s1 = inlined_call_operand.vmem [shape: bf16[96,192], index: 1, kind: input, shape index: {}]   ;;  %s984_s2 = inlined_call_operand.vmem [shape: f32[96,1], index: 2, kind: input, shape index: {}]   ;;  %s985_s3 = inlined_call_operand.vmem [shape: f32[2,96,64], index: 3, kind: output, shape index: {}]  }
   0x1   :  { %s802_s14 = smov 0  }
   0x2 LB: > { %s25_s15 = sadd.s32 1, %s771_s13  ;;  %p636_p0 = scmp.ge.s32.totalorder %s775_s14, 1  ;;  %s775_s14 = sphi %s802_s14, %s13_s14   ;;  %s771_s13 = sphi %s800_s13, %s987_s13   ;;  %s767_s12 = sphi %s798_s12, %s986_s12  }
   0x3   : > { %p27_p1 = scmp.ge.s32.totalorder %s25_s15, 2  ;;  %p156_p2 = scmp.lt.s32.totalorder %s775_s14, 3 }
   0x5   : > { %s989_s15 = smov (%p27_p1, %s25_s15), 0  ;;  %p157_p3 = pnand %p636_p0, %p156_p2 }
   0x6   : > { %p186_p4 = scmp.lt.s32.totalorder (!%p157_p3), %s767_s12, 1  ;;  %v777_v0 = vmov (!%p157_p3), 0   ;;  %v737_v1 = vld [vmem:[%s983_s1 + $0x4] ss:$8 sps:$4 sm:$0xff] (!%p157_p3)   ;;  %vm437_vm0 = vcmask (!%p157_p3), 523264   ;;  %v241_v7 = vld [vmem:[%s984_s2 + $0x10] sm:$0xff] (!%p157_p3) }
   0x7   : > { %160 = sbr.rel (%p157_p3) target bundleno = 299 (0x12b), region = 32  ;;  %456 = vmatprep.subr.bf16.mxu0 (!%p157_p3), %v777_v0  ;;  %671 = vmatprep.subr.bf16.mxu1 (!%p157_p3), %v777_v0  ;;  %v740_v2 = vld [vmem:[%s983_s1 + $0x34] ss:$8 sps:$4 sm:$0xff] (!%p157_p3)   ;;  %v239_v8 = vld [vmem:[%s984_s2] sm:$0xff] (!%p157_p3)  ;;  %v240_v11 = vld [vmem:[%s984_s2 + $0x8] sm:$0xff] (!%p157_p3) }
   0x8   : > { %722 = vset.pattern.permute.xlu1 (!%p157_p3), %v777_v0  ;;  %721 = vset.pattern.permute.xlu0 (!%p157_p3), %v777_v0  ;;  %v242_v10 = vld [vmem:[%s984_s2 + $0x18] sm:$0xff] (!%p157_p3)  ;;  %v244_v13 = vld [vmem:[%s984_s2 + $0x28] sm:$0xff] (!%p157_p3)  ;;  %v243_v14 = vld [vmem:[%s984_s2 + $0x20] sm:$0xff] (!%p157_p3) }
   0x9   : > { %663 = vmatprep.mubr.msk.bf16.mxu0 (!%p157_p3), %vm437_vm0, %v737_v1  ;;  %666 = vmatprep.mubr.msk.bf16.mxu1 (!%p157_p3), %vm437_vm0, %v740_v2  ;;  %v246_v16 = vld [vmem:[%s984_s2 + $0x38] sm:$0xff] (!%p157_p3)  ;;  %v245_v17 = vld [vmem:[%s984_s2 + $0x30] sm:$0xff] (!%p157_p3)  ;;  %v248_v19 = vld [vmem:[%s984_s2 + $0x48] sm:$0xff] (!%p157_p3) }
   0xa   : > { %263 = vperm.xlu1 (!%p157_p3), %722, %v241_v7   ;;  %253 = vperm.xlu0 (!%p157_p3), %721, %v239_v8   ;;  %v247_v20 = vld [vmem:[%s984_s2 + $0x40] sm:$0xff] (!%p157_p3)  ;;  %v250_v22 = vld [vmem:[%s984_s2 + $0x58] sm:$0xff] (!%p157_p3)  ;;  %v249_v23 = vld [vmem:[%s984_s2 + $0x50] sm:$0xff] (!%p157_p3) }
   0xb   : > { %v735_v27 = vld [vmem:[%s983_s1] ss:$8 sps:$4 sm:$0xff] (!%p157_p3)   ;;  %v738_v28 = vld [vmem:[%s983_s1 + $0x30] ss:$8 sps:$4 sm:$0xff] (!%p157_p3)   ;;  %v741_v29 = vld [vmem:[%s983_s1 + $0x14] ss:$8 sps:$4 sm:$0xff] (!%p157_p3)  }
   0xc   : > { %v743_v30 = vld [vmem:[%s983_s1 + $0x44] ss:$8 sps:$4 sm:$0xff] (!%p157_p3)   ;;  %v745_v31 = vld [vmem:[%s983_s1 + $0x10] ss:$8 sps:$4 sm:$0xff] (!%p157_p3)   ;;  %v746_v32 = vld [vmem:[%s983_s1 + $0x40] ss:$8 sps:$4 sm:$0xff] (!%p157_p3)  }
   0xd   : > { %v747_v33 = vld [vmem:[%s983_s1 + $0x24] ss:$8 sps:$4 sm:$0xff] (!%p157_p3)   ;;  %v749_v34 = vld [vmem:[%s983_s1 + $0x54] ss:$8 sps:$4 sm:$0xff] (!%p157_p3)   ;;  %v751_v35 = vld [vmem:[%s983_s1 + $0x20] ss:$8 sps:$4 sm:$0xff] (!%p157_p3)  }
   0xe   : > { %s991_s12 = smov (!%p186_p4, %s767_s12), 1  ;;  %268 = vperm.xlu1 %722, %v242_v10   ;;  %258 = vperm.xlu0 %721, %v240_v11   ;;  %v752_v36 = vld [vmem:[%s983_s1 + $0x50] ss:$8 sps:$4 sm:$0xff]  }
   0xf   : > { %s695_s20 = smul.u32 96, %s991_s12 }
  0x11   : > { %s836_s23 = scalar_lea.vmem %s982_s0, %s695_s20  ;;  %s947_s27 = scalar_lea.vmem %s985_s3, %s695_s20 }
  0x12   : > { %v723_v3 = vld [vmem:[%s836_s23] sm:$0xff]   ;;  %v724_v4 = vld [vmem:[%s836_s23 + $0x8] sm:$0xff]   ;;  %v725_v5 = vld [vmem:[%s836_s23 + $0x10] sm:$0xff]   ;;  %278 = vperm.xlu1 %722, %v244_v13   ;;  %273 = vperm.xlu0 %721, %v243_v14  }
  0x13   : > { %457 = vmatpush1.bf16.msra.mxu0 %v723_v3  ;;  %683 = vmatpush1.bf16.msra.mxu1 %v723_v3  ;;  %v726_v6 = vld [vmem:[%s836_s23 + $0x18] sm:$0xff]   ;;  %v727_v9 = vld [vmem:[%s836_s23 + $0x20] sm:$0xff]   ;;  %v728_v12 = vld [vmem:[%s836_s23 + $0x28] sm:$0xff]  }
  0x14   : > { %458 = vmatprep.subr.bf16.mxu0 %v777_v0  ;;  %672 = vmatprep.subr.bf16.mxu1 %v777_v0  ;;  %v729_v15 = vld [vmem:[%s836_s23 + $0x30] sm:$0xff]   ;;  %v730_v18 = vld [vmem:[%s836_s23 + $0x38] sm:$0xff]   ;;  %v731_v21 = vld [vmem:[%s836_s23 + $0x40] sm:$0xff]  }
  0x15   : > { %v732_v24 = vld [vmem:[%s836_s23 + $0x48] sm:$0xff]   ;;  %v733_v25 = vld [vmem:[%s836_s23 + $0x50] sm:$0xff]   ;;  %v734_v26 = vld [vmem:[%s836_s23 + $0x58] sm:$0xff]  }
  0x16   : > { %288 = vperm.xlu1 %722, %v246_v16   ;;  %283 = vperm.xlu0 %721, %v245_v17  }
  0x17   : > { %459 = vmatpush1.bf16.msra.mxu0 %v724_v4  ;;  %684 = vmatpush1.bf16.msra.mxu1 %v724_v4 }
  0x18   : > { %460 = vmatprep.subr.bf16.mxu0 %v777_v0  ;;  %673 = vmatprep.subr.bf16.mxu1 %v777_v0 }
  0x1a   : > { %298 = vperm.xlu1 %722, %v248_v19   ;;  %293 = vperm.xlu0 %721, %v247_v20  }
  0x1b   : > { %461 = vmatpush1.bf16.msra.mxu0 %v725_v5  ;;  %685 = vmatpush1.bf16.msra.mxu1 %v725_v5 }
  0x1c   : > { %462 = vmatprep.subr.bf16.mxu0 %v777_v0  ;;  %674 = vmatprep.subr.bf16.mxu1 %v777_v0 }
  0x1e   : > { %308 = vperm.xlu1 %722, %v250_v22   ;;  %303 = vperm.xlu0 %721, %v249_v23  }
  0x1f   : > { %463 = vmatpush1.bf16.msra.mxu0 %v726_v6  ;;  %686 = vmatpush1.bf16.msra.mxu1 %v726_v6 }
  0x20   : > { %464 = vmatprep.subr.bf16.mxu0 %v777_v0  ;;  %675 = vmatprep.subr.bf16.mxu1 %v777_v0 }
  0x23   : > { %465 = vmatpush1.bf16.msra.mxu0 %v727_v9  ;;  %687 = vmatpush1.bf16.msra.mxu1 %v727_v9 }
  0x24   : > { %466 = vmatprep.subr.bf16.mxu0 %v777_v0  ;;  %676 = vmatprep.subr.bf16.mxu1 %v777_v0 }
  0x27   : > { %467 = vmatpush1.bf16.msra.mxu0 %v728_v12  ;;  %688 = vmatpush1.bf16.msra.mxu1 %v728_v12 }
  0x28   : > { %468 = vmatprep.subr.bf16.mxu0 %v777_v0  ;;  %677 = vmatprep.subr.bf16.mxu1 %v777_v0 }
  0x2b   : > { %469 = vmatpush1.bf16.msra.mxu0 %v729_v15  ;;  %689 = vmatpush1.bf16.msra.mxu1 %v729_v15 }
  0x2c   : > { %470 = vmatprep.subr.bf16.mxu0 %v777_v0  ;;  %678 = vmatprep.subr.bf16.mxu1 %v777_v0 }
  0x2f   : > { %471 = vmatpush1.bf16.msra.mxu0 %v730_v18  ;;  %690 = vmatpush1.bf16.msra.mxu1 %v730_v18 }
  0x30   : > { %472 = vmatprep.subr.bf16.mxu0 %v777_v0  ;;  %679 = vmatprep.subr.bf16.mxu1 %v777_v0 }
  0x33   : > { %473 = vmatpush1.bf16.msra.mxu0 %v731_v21  ;;  %691 = vmatpush1.bf16.msra.mxu1 %v731_v21 }
  0x34   : > { %474 = vmatprep.subr.bf16.mxu0 %v777_v0  ;;  %680 = vmatprep.subr.bf16.mxu1 %v777_v0 }
  0x37   : > { %475 = vmatpush1.bf16.msra.mxu0 %v732_v24  ;;  %692 = vmatpush1.bf16.msra.mxu1 %v732_v24 }
  0x38   : > { %476 = vmatprep.subr.bf16.mxu0 %v777_v0  ;;  %681 = vmatprep.subr.bf16.mxu1 %v777_v0 }
  0x3b   : > { %477 = vmatpush1.bf16.msra.mxu0 %v733_v25  ;;  %693 = vmatpush1.bf16.msra.mxu1 %v733_v25 }
  0x3c   : > { %478 = vmatprep.subr.bf16.mxu0 %v777_v0  ;;  %682 = vmatprep.subr.bf16.mxu1 %v777_v0 }
  0x3f   : > { %479 = vmatpush1.bf16.msra.mxu0 %v734_v26  ;;  %694 = vmatpush1.bf16.msra.mxu1 %v734_v26 }
  0x42   : > { %489 = vmatmul.mubr.bf16.vlgmr.msra.gmra.mrb[0].mxu0 %v735_v27  ;;  %513 = vmatmul.mubr.bf16.vlgmr.msra.gmra.mrb[0].mxu1 %v738_v28 }
  0x43   : > { %664 = vmatprep.mubr.msk.bf16.mxu0 %vm437_vm0, %v741_v29  ;;  %667 = vmatprep.mubr.msk.bf16.mxu1 %vm437_vm0, %v743_v30 }
  0x4a   : > { %497 = vmatmul.mubr.bf16.gmra.mrb[4].mxu0 %v745_v31  ;;  %521 = vmatmul.mubr.bf16.gmra.mrb[4].mxu1 %v746_v32 }
  0x4b   : > { %665 = vmatprep.mubr.msk.bf16.mxu0 %vm437_vm0, %v747_v33  ;;  %668 = vmatprep.mubr.msk.bf16.mxu1 %vm437_vm0, %v749_v34 }
  0x52   : > { %505 = vmatmul.mubr.bf16.gmra.mrb[8].mxu0 %v751_v35  ;;  %529 = vmatmul.mubr.bf16.gmra.mrb[8].mxu1 %v752_v36 }
  0x89   : > { %v264_v37 = vpop.permute.xlu1 %263  ;;  %v254_v38 = vpop.permute.xlu0 %253 }
  0x8d   : > { %v269_v39 = vpop.permute.xlu1 %268  ;;  %v259_v40 = vpop.permute.xlu0 %258 }
  0x91   : > { %v279_v41 = vpop.permute.xlu1 %278  ;;  %v274_v42 = vpop.permute.xlu0 %273 }
  0x95   : > { %v289_v43 = vpop.permute.xlu1 %288  ;;  %v284_v44 = vpop.permute.xlu0 %283 }
  0x99   : > { %v299_v57 = vpop.permute.xlu1 %298  ;;  %v294_v58 = vpop.permute.xlu0 %293 }
  0x9d   : > { %v309_v7 = vpop.permute.xlu1 %308  ;;  %v304_v8 = vpop.permute.xlu0 %303 }
 0x115   : > { %v490_v45 = vpop.f32.mrb[0].mxu0  ;;  %v514_v46 = vpop.f32.mrb[0].mxu1 }
 0x116   : > { %v491_v47 = vadd.f32 %v490_v45, %v254_v38  ;;  %v515_v48 = vadd.f32 %v514_v46, %v284_v44  ;;  %v492_v49 = vpop.f32.mrb[1].mxu0  ;;  %v516_v50 = vpop.f32.mrb[1].mxu1 }
 0x117   : > { %v493_v51 = vpop.f32.mrb[2].mxu0  ;;  %v517_v52 = vpop.f32.mrb[2].mxu1 }
 0x118   : > { %537 = vst.msk [vmem:[%s947_s27] sm:$0xff] %vm437_vm0, %v491_v47  ;;  %543 = vst.msk [vmem:[%s947_s27 + $0x30] sm:$0xff] %vm437_vm0, %v515_v48  ;;  %v494_v53 = vadd.f32 %v493_v51, %v259_v40  ;;  %v518_v54 = vadd.f32 %v517_v52, %v289_v43  ;;  %v495_v55 = vpop.f32.mrb[3].mxu0  ;;  %v519_v56 = vpop.f32.mrb[3].mxu1 }
 0x11a   : > { %538 = vst.msk [vmem:[%s947_s27 + $0x8] sm:$0xff] %vm437_vm0, %v494_v53  ;;  %544 = vst.msk [vmem:[%s947_s27 + $0x38] sm:$0xff] %vm437_vm0, %v518_v54 }
 0x11d   : > { %v498_v59 = vpop.f32.mrb[4].mxu0  ;;  %v522_v60 = vpop.f32.mrb[4].mxu1 }
 0x11e   : > { %v499_v61 = vadd.f32 %v498_v59, %v264_v37  ;;  %v523_v62 = vadd.f32 %v522_v60, %v294_v58  ;;  %v500_v63 = vpop.f32.mrb[5].mxu0  ;;  %v524_v0 = vpop.f32.mrb[5].mxu1 }
 0x11f   : > { %v501_v1 = vpop.f32.mrb[6].mxu0  ;;  %v525_v2 = vpop.f32.mrb[6].mxu1 }
 0x120   : > { %539 = vst.msk [vmem:[%s947_s27 + $0x10] sm:$0xff] %vm437_vm0, %v499_v61  ;;  %545 = vst.msk [vmem:[%s947_s27 + $0x40] sm:$0xff] %vm437_vm0, %v523_v62  ;;  %v502_v3 = vadd.f32 %v501_v1, %v269_v39  ;;  %v526_v4 = vadd.f32 %v525_v2, %v299_v57  ;;  %v503_v5 = vpop.f32.mrb[7].mxu0  ;;  %v527_v6 = vpop.f32.mrb[7].mxu1 }
 0x122   : > { %540 = vst.msk [vmem:[%s947_s27 + $0x18] sm:$0xff] %vm437_vm0, %v502_v3  ;;  %546 = vst.msk [vmem:[%s947_s27 + $0x48] sm:$0xff] %vm437_vm0, %v526_v4 }
 0x125   : > { %v506_v9 = vpop.f32.mrb[8].mxu0  ;;  %v530_v10 = vpop.f32.mrb[8].mxu1 }
 0x126   : > { %v507_v11 = vadd.f32 %v506_v9, %v274_v42  ;;  %v531_v12 = vadd.f32 %v530_v10, %v304_v8  ;;  %v508_v13 = vpop.f32.mrb[9].mxu0  ;;  %v532_v14 = vpop.f32.mrb[9].mxu1 }
 0x127   : > { %v509_v15 = vpop.f32.mrb[10].mxu0  ;;  %v533_v16 = vpop.f32.mrb[10].mxu1 }
 0x128   : > { %541 = vst.msk [vmem:[%s947_s27 + $0x20] sm:$0xff] %vm437_vm0, %v507_v11  ;;  %547 = vst.msk [vmem:[%s947_s27 + $0x50] sm:$0xff] %vm437_vm0, %v531_v12  ;;  %v510_v17 = vadd.f32 %v509_v15, %v279_v41  ;;  %v534_v18 = vadd.f32 %v533_v16, %v309_v7  ;;  %v511_v19 = vpop.f32.mrb[11].mxu0  ;;  %v535_v20 = vpop.f32.mrb[11].mxu1 }
 0x12a   : > { %542 = vst.msk [vmem:[%s947_s27 + $0x28] sm:$0xff] %vm437_vm0, %v510_v17  ;;  %548 = vst.msk [vmem:[%s947_s27 + $0x58] sm:$0xff] %vm437_vm0, %v534_v18 }
 0x12b PF: > { %s13_s14 = sadd.s32 1, %s775_s14   ;;  %s986_s12 = smov %s771_s13 }
 0x12c   : > { %p10_p5 = scmp.ge.s32.totalorder %s13_s14, 4   ;;  %s987_s13 = smov %s989_s15 }
 0x12e   :  { %12 = sbr.rel (!%p10_p5) target bundleno = 2 (0x2), region = 62 }

</bundles_post_ra>
